<compile_context>
chip_gen: v7x
topology: tpu7x:2x2x1
jax: 0.10.0
libtpu: 0.0.40
codegen_flags: <defaults>
</compile_context>

<pallas_src>
import jax
import jax.numpy as jnp
from jax.experimental import pallas as pl
from jax.experimental.pallas import tpu as pltpu


_VMEM_LIMIT_BYTES = 32 * 1024 * 1024        # safe on v5e/v6e/v7x
_RESIDENT_WEIGHT_BUDGET = 12 * 1024 * 1024  # double-buffered footprint gate


def _round_up(x, m):
    return ((x + m - 1) // m) * m


# --------------------------------------------------------------------------
# Path A: resident weight, 1-D grid over M (typical TimeDistributed sizes).
# --------------------------------------------------------------------------
def _linear_resident_kernel(x_ref, w_ref, b_ref, o_ref):
    acc = jnp.dot(x_ref[...], w_ref[...], preferred_element_type=jnp.float32)
    o_ref[...] = (acc + b_ref[...].astype(jnp.float32)).astype(o_ref.dtype)


# --------------------------------------------------------------------------
# Path B: general (M, N, K) tiled GEMM for weights too large for VMEM.
# --------------------------------------------------------------------------
def _gemm_kernel_out_acc(x_ref, w_ref, b_ref, o_ref):
    """f32 output: accumulate directly into o_ref (no scratch, no final copy)."""
    k = pl.program_id(2)

    @pl.when(k == 0)
    def _():
        o_ref[...] = jnp.zeros_like(o_ref)

    o_ref[...] += jnp.dot(x_ref[...], w_ref[...],
                          preferred_element_type=jnp.float32)

    @pl.when(k == pl.num_programs(2) - 1)
    def _():
        o_ref[...] += b_ref[...].astype(o_ref.dtype)


def _gemm_kernel_scratch_acc(x_ref, w_ref, b_ref, o_ref, acc_ref):
    """non-f32 output: f32 VMEM accumulator, cast on the last K step."""
    k = pl.program_id(2)

    @pl.when(k == 0)
    def _():
        acc_ref[...] = jnp.zeros_like(acc_ref)

    acc_ref[...] += jnp.dot(x_ref[...], w_ref[...],
                            preferred_element_type=jnp.float32)

    @pl.when(k == pl.num_programs(2) - 1)
    def _():
        o_ref[...] = (acc_ref[...] + b_ref[...].astype(jnp.float32)).astype(
            o_ref.dtype)


def pallas_linear(x2d, w, b, *, tm=512, tk=512, tn=512, compute_dtype=None,
                  force_general=False):
    """y = x2d @ w + b   (x2d: (M, K), w: (K, N) == Linear.weight.T, b: (N,))."""
    M, K = x2d.shape
    Kw, N = w.shape
    assert K == Kw, (K, Kw)
    assert b.shape == (N,), b.shape
    out_dtype = x2d.dtype

    if compute_dtype is not None:
        if jnp.dtype(compute_dtype).itemsize < 2:
            # TODO(synk): int8 / fp8 operands need (32, 128) tiling + scale handling.
            raise ValueError("compute_dtype must be float32 or bfloat16")
        x2d = x2d.astype(compute_dtype)
        w = w.astype(compute_dtype)

    in_size = jnp.dtype(x2d.dtype).itemsize
    out_size = jnp.dtype(out_dtype).itemsize
    sub = 8 if in_size >= 4 else 16  # sublane packing: f32 -> 8, bf16 -> 16

    b2d = b.reshape(1, N)

    # ---- Path A: whole weight resident in VMEM, grid over M only ----------
    tm_a = min(_round_up(tm, sub), _round_up(M, sub))
    if pl.cdiv(M, tm_a) < 2 and M > 128:
        # >= 2 M blocks so both v7x TensorCores get work on the parallel axis.
        tm_a = _round_up((M + 1) // 2, sub)
    footprint_a = (2 * tm_a * K * in_size       # x tiles (double-buffered)
                   + 2 * K * N * in_size        # weight (conservative 2x)
                   + 2 * tm_a * N * out_size    # out tiles
                   + 2 * N * 4)                 # bias
    if (not force_general) and footprint_a <= _RESIDENT_WEIGHT_BUDGET:
        return pl.pallas_call(
            _linear_resident_kernel,
            out_shape=jax.ShapeDtypeStruct((M, N), out_dtype),
            grid_spec=pltpu.PrefetchScalarGridSpec(
                num_scalar_prefetch=0,
                grid=(pl.cdiv(M, tm_a),),
                in_specs=[
                    pl.BlockSpec((tm_a, K), lambda i: (i, 0)),  # x row tile
                    pl.BlockSpec((K, N), lambda i: (0, 0)),     # resident weight
                    pl.BlockSpec((1, N), lambda i: (0, 0)),     # bias
                ],
                out_specs=pl.BlockSpec((tm_a, N), lambda i: (i, 0)),
            ),
            compiler_params=pltpu.CompilerParams(
                dimension_semantics=("parallel",),
                vmem_limit_bytes=_VMEM_LIMIT_BYTES,
            ),
        )(x2d, w, b2d)

    # ---- Path B: general (M, N, K) tiled GEMM ------------------------------
    # Only the contraction axis needs zero padding (it is correctness critical);
    # pick tk among 128-multiples to minimize that padding.  M / N ragged edges
    # are handled by cdiv grids: OOB reads only feed output rows/cols whose
    # writeback is masked.
    Kp = _round_up(K, 128)
    tk_desired = max(128, (tk // 128) * 128)
    if Kp <= tk_desired:
        tk_b = Kp
    else:
        candidates = range(128, tk_desired + 1, 128)
        tk_b = max(candidates, key=lambda c: (-_round_up(Kp, c), c))
    Kp = _round_up(Kp, tk_b)

    tn_b = max(128, min((tn // 128) * 128, _round_up(N, 128)))
    tm_b = min(_round_up(tm, sub), _round_up(M, sub))

    xp = x2d if Kp == K else jnp.pad(x2d, ((0, 0), (0, Kp - K)))
    wp = w if Kp == K else jnp.pad(w, ((0, Kp - K), (0, 0)))

    grid = (pl.cdiv(M, tm_b), pl.cdiv(N, tn_b), Kp // tk_b)

    out_is_f32 = jnp.dtype(out_dtype) == jnp.dtype(jnp.float32)
    kernel = _gemm_kernel_out_acc if out_is_f32 else _gemm_kernel_scratch_acc
    scratch = [] if out_is_f32 else [pltpu.VMEM((tm_b, tn_b), jnp.float32)]

    return pl.pallas_call(
        kernel,
        out_shape=jax.ShapeDtypeStruct((M, N), out_dtype),
        grid_spec=pltpu.PrefetchScalarGridSpec(
            num_scalar_prefetch=0,
            grid=grid,
            in_specs=[
                pl.BlockSpec((tm_b, tk_b), lambda i, j, k: (i, k)),  # x tile
                pl.BlockSpec((tk_b, tn_b), lambda i, j, k: (k, j)),  # w tile
                pl.BlockSpec((1, tn_b), lambda i, j, k: (0, j)),     # bias slice
            ],
            out_specs=pl.BlockSpec((tm_b, tn_b), lambda i, j, k: (i, j)),
            scratch_shapes=scratch,
        ),
        compiler_params=pltpu.CompilerParams(
            dimension_semantics=("parallel", "parallel", "arbitrary"),
            vmem_limit_bytes=_VMEM_LIMIT_BYTES,
        ),
    )(xp, wp, b2d)


def time_distributed_linear(x, w, b, *, batch_first=False, prefer_pallas=None,
                            compute_dtype=None, tm=512, tk=512, tn=512,
                            force_general=False):
    """Pallas implementation of TimeDistributed(Linear(K, N)) forward."""
    K = x.shape[-1]
    N = w.shape[1]

    def _apply(x2d):
        M = x2d.shape[0]
        use_pallas = prefer_pallas
        if use_pallas is None:
            # Tiny layers are pure launch/grid overhead; stay in fused XLA.
            use_pallas = (2 * M * K * N) >= (1 << 24)
        if use_pallas:
            return pallas_linear(x2d, w, b, tm=tm, tk=tk, tn=tn,
                                 compute_dtype=compute_dtype,
                                 force_general=force_general)
        xc = x2d if compute_dtype is None else x2d.astype(compute_dtype)
        wc = w if compute_dtype is None else w.astype(compute_dtype)
        y = jnp.dot(xc, wc, preferred_element_type=jnp.float32) + b
        return y.astype(x2d.dtype)

    if x.ndim <= 2:
        x2d = x if x.ndim == 2 else x.reshape(1, -1)
        y = _apply(x2d)
        return y if x.ndim == 2 else y.reshape(-1)

    x_reshape = x.reshape(-1, K)               # x.contiguous().view(-1, F_in)
    y = _apply(x_reshape)                      # module(x_reshape)
    if batch_first:
        return y.reshape(x.shape[0], -1, N)    # (B, T, N)
    return y.reshape(-1, x.shape[1], N)        # (T, B, N)


if __name__ == "__main__":
    key = jax.random.PRNGKey(0)

    # ---- Test 1: small module-consistent shapes (seq=8, batch=2, hidden=32).
    # Force the Pallas path (resident-weight kernel) so it actually runs. ----
    T, B, F_IN, F_OUT = 8, 2, 32, 32
    kx, kw, kb, key = jax.random.split(key, 4)
    x = jax.random.normal(kx, (T, B, F_IN), dtype=jnp.float32)
    bound = 1.0 / (F_IN ** 0.5)
    w = jax.random.uniform(kw, (F_IN, F_OUT), jnp.float32, -bound, bound)
    b = jax.random.uniform(kb, (F_OUT,), jnp.float32, -bound, bound)

    y = time_distributed_linear(x, w, b, batch_first=False, prefer_pallas=True)
    y = jax.block_until_ready(y)
    y_ref = (x.reshape(-1, F_IN) @ w + b).reshape(-1, B, F_OUT)
    assert y.shape == (T, B, F_OUT), y.shape
    assert jnp.allclose(y, y_ref, atol=1e-2, rtol=1e-2)

    y_bf = time_distributed_linear(x, w, b, batch_first=True, prefer_pallas=True)
    y_bf = jax.block_until_ready(y_bf)
    y_bf_ref = (x.reshape(-1, F_IN) @ w + b).reshape(T, -1, F_OUT)
    assert y_bf.shape == (T, B, F_OUT), y_bf.shape
    assert jnp.allclose(y_bf, y_bf_ref, atol=1e-2, rtol=1e-2)

    # ---- Test 2: larger shapes — resident-weight path with >1 M block and a
    # non-128-multiple-of-256 output width (no padding copies needed). -------
    T2, B2, F_IN2, F_OUT2 = 64, 8, 512, 384
    kx2, kw2, kb2, key = jax.random.split(key, 4)
    x2 = jax.random.normal(kx2, (T2, B2, F_IN2), dtype=jnp.float32)
    bound2 = 1.0 / (F_IN2 ** 0.5)
    w2 = jax.random.uniform(kw2, (F_IN2, F_OUT2), jnp.float32, -bound2, bound2)
    b2 = jax.random.uniform(kb2, (F_OUT2,), jnp.float32, -bound2, bound2)

    y2 = time_distributed_linear(x2, w2, b2, batch_first=False,
                                 prefer_pallas=True)
    y2 = jax.block_until_ready(y2)
    y2_ref = (x2.reshape(-1, F_IN2) @ w2 + b2).reshape(-1, B2, F_OUT2)
    assert y2.shape == (T2, B2, F_OUT2), y2.shape
    assert jnp.allclose(y2, y2_ref, atol=2e-2, rtol=2e-2)

    # ---- Test 3: force the general tiled path (M/N/K grid, ragged N blocks,
    # direct o_ref accumulation for f32 output). -----------------------------
    y3 = time_distributed_linear(x2, w2, b2, batch_first=False,
                                 prefer_pallas=True, force_general=True,
                                 tm=256, tn=256, tk=256)
    y3 = jax.block_until_ready(y3)
    assert y3.shape == (T2, B2, F_OUT2), y3.shape
    assert jnp.allclose(y3, y2_ref, atol=2e-2, rtol=2e-2)

    # ---- Test 4: bf16 MXU operands (f32 accumulation + f32 bias). ----------
    y4 = time_distributed_linear(x2, w2, b2, batch_first=False,
                                 prefer_pallas=True,
                                 compute_dtype=jnp.bfloat16)
    y4 = jax.block_until_ready(y4)
    assert y4.shape == (T2, B2, F_OUT2), y4.shape
    assert jnp.allclose(y4, y2_ref, atol=8e-2, rtol=8e-2)

    print("KERNEL_OK")
</pallas_src>

<mosaic_0001>
module attributes {stable_mosaic.version = 11 : i64} {
  func.func @_linear_resident_kernel(%arg0: i32, %arg1: memref<16x32xf32, #tpu.memory_space<vmem>>, %arg2: memref<32x32xf32, #tpu.memory_space<vmem>>, %arg3: memref<1x32xf32, #tpu.memory_space<vmem>>, %arg4: memref<16x32xf32, #tpu.memory_space<vmem>>) attributes {dimension_semantics = [#tpu.dimension_semantics<parallel>], iteration_bounds = array<i64: 1>, scalar_prefetch = 0 : i64, scratch_operands = 0 : i64, tpu.core_type = #tpu.core_type<tc>, window_params = [{transform_indices = @transform_0, window_bounds = array<i64: 16, 32>}, {pipeline_mode = #tpu.pipeline_mode<synchronous>, transform_indices = @transform_1, window_bounds = array<i64: 32, 32>}, {pipeline_mode = #tpu.pipeline_mode<synchronous>, transform_indices = @transform_2, window_bounds = array<i64: 1, 32>}, {transform_indices = @transform_3, window_bounds = array<i64: 16, 32>}]} {
    %c0 = arith.constant 0 : index
    %c0_0 = arith.constant 0 : index
    %0 = vector.load %arg1[%c0, %c0_0] : memref<16x32xf32, #tpu.memory_space<vmem>>, vector<16x32xf32>
    %c0_1 = arith.constant 0 : index
    %c0_2 = arith.constant 0 : index
    %1 = vector.load %arg2[%c0_1, %c0_2] : memref<32x32xf32, #tpu.memory_space<vmem>>, vector<32x32xf32>
    %cst = arith.constant dense<0.000000e+00> : vector<16x32xf32>
    %2 = tpu.matmul %0, %1, %cst {dimension_numbers = #tpu.dot_dimension_numbers<[1], [0], [0], [1], [0, 0, 1, 1], [], []>} : vector<16x32xf32>, vector<32x32xf32>, vector<16x32xf32> -> vector<16x32xf32>
    %c0_3 = arith.constant 0 : index
    %c0_4 = arith.constant 0 : index
    %3 = vector.load %arg3[%c0_3, %c0_4] : memref<1x32xf32, #tpu.memory_space<vmem>>, vector<1x32xf32>
    %4 = vector.broadcast %3 : vector<1x32xf32> to vector<16x32xf32>
    %5 = arith.addf %2, %4 : vector<16x32xf32>
    %c0_5 = arith.constant 0 : index
    %c0_6 = arith.constant 0 : index
    %6 = vector.load %arg4[%c0_5, %c0_6] : memref<16x32xf32, #tpu.memory_space<vmem>>, vector<16x32xf32>
    tpu.vector_store %arg4[%c0_5, %c0_6], %5 {strides = array<i32>} : memref<16x32xf32, #tpu.memory_space<vmem>>, vector<16x32xf32>,
    return
  }
  func.func @transform_0(%arg0: i32) -> (i32, i32) {
    %c0_i32 = arith.constant 0 : i32
    %c0_i32_0 = arith.constant 0 : i32
    return %arg0, %c0_i32 : i32, i32
  }
  func.func @transform_1(%arg0: i32) -> (i32, i32) {
    %c0_i32 = arith.constant 0 : i32
    %c0_i32_0 = arith.constant 0 : i32
    %c0_i32_1 = arith.constant 0 : i32
    return %c0_i32, %c0_i32_0 : i32, i32
  }
  func.func @transform_2(%arg0: i32) -> (i32, i32) {
    %c0_i32 = arith.constant 0 : i32
    %c0_i32_0 = arith.constant 0 : i32
    %c0_i32_1 = arith.constant 0 : i32
    return %c0_i32, %c0_i32_0 : i32, i32
  }
  func.func @transform_3(%arg0: i32) -> (i32, i32) {
    %c0_i32 = arith.constant 0 : i32
    %c0_i32_0 = arith.constant 0 : i32
    return %arg0, %c0_i32 : i32, i32
  }
}

</mosaic_0001>

<bundles_post_ra>
// kernel: tpu_custom_call.1
= control target key start
LH: loop header
LB: loop body
LE: loop exit
PB: predicated region body
PF: predicated region fallthrough
CT: control target
= control target key end

     0   :  { %8 = vsyncpa [#allocation3], 0  ;;  %s340_s0 = inlined_call_operand.hbm [shape: f32[16,32], index: 0, kind: input, shape index: {}]   ;;  %s341_s1 = inlined_call_operand.hbm [shape: f32[32,32], index: 1, kind: input, shape index: {}]   ;;  %s342_s2 = inlined_call_operand.vmem [shape: f32[1,32], index: 2, kind: input, shape index: {}]   ;;  %s343_s3 = inlined_call_operand.hbm [shape: f32[16,32], index: 3, kind: output, shape index: {}]  }
   0x1   :  { %9 = vsyncpa [#allocation6], 0 }
   0x2   :  { %10 = vsyncpa [#allocation4], 0  ;;  %s263_s12 = smov [#allocation2]   ;;  %s191_s16 = scalar_lea.hbm %s340_s0, 256 }
   0x3   :  { %s16_s13 = sshll.u32 %s263_s12, 4  ;;  %p192_p0 = scmp.ne.s32.totalorder %s340_s0, %s191_s16  ;;  %s17_s13 = int_to_ptr.vmem [resolvable:$true] %s16_s13 }
   0x4   :  { %p195_p1 = scmp.lt.u32.totalorder %s191_s16, %s340_s0 }
   0x6   :  { %p197_p2 = pnand %p195_p1, %p192_p0 }
   0x8   :  { %200 = shalt.err (!%p197_p2)
}
   0x9   :  { %s201_s21 = scalar_lea.vmem %s17_s13, 256  ;;  %p206_p4 = scmp.lt.s32.totalorder %s17_s13, %s17_s13 }
   0xa   :  { %p202_p3 = scmp.ne.s32.totalorder %s17_s13, %s201_s21  ;;  %p207_p5 = scmp.lt.s32.totalorder %s201_s21, %s201_s21 }
   0xc   :  { %p208_p6 = por %p207_p5, %p206_p4 }
   0xe   :  { %p209_p7 = pnand %p208_p6, %p202_p3 }
  0x10   :  { %212 = shalt.err (!%p209_p7)
}
  0x11   :  { %s264_s22 = smov 128   ;;  %s265_s23 = smov 8  }
  0x12   :  { %22 = dma.hbm_to_vmem [thread:$0]  %s340_s0, 256, %s17_s13, [#allocation3], %s264_s22, %s264_s22, %s265_s23  }
  0x13   :  { %s266_s26 = smov [#allocation5]   ;;  %s213_s30 = scalar_lea.hbm %s341_s1, 512 }
  0x14   :  { %s28_s27 = sshll.u32 %s266_s26, 4  ;;  %p214_p8 = scmp.ne.s32.totalorder %s341_s1, %s213_s30  ;;  %s29_s27 = int_to_ptr.vmem [resolvable:$true] %s28_s27 }
  0x15   :  { %p217_p9 = scmp.lt.u32.totalorder %s213_s30, %s341_s1 }
  0x17   :  { %p219_p10 = pnand %p217_p9, %p214_p8 }
  0x19   :  { %222 = shalt.err (!%p219_p10)
}
  0x1a   :  { %s223_s8 = scalar_lea.vmem %s29_s27, 512  ;;  %p228_p12 = scmp.lt.s32.totalorder %s29_s27, %s29_s27 }
  0x1b   :  { %p224_p11 = scmp.ne.s32.totalorder %s29_s27, %s223_s8  ;;  %p229_p13 = scmp.lt.s32.totalorder %s223_s8, %s223_s8 }
  0x1d   :  { %p230_p0 = por %p229_p13, %p228_p12 }
  0x1f   :  { %p231_p1 = pnand %p230_p0, %p224_p11 }
  0x21   :  { %234 = shalt.err (!%p231_p1)
}
  0x22   :  { %34 = dma.hbm_to_vmem [thread:$0]  %s341_s1, 512, %s29_s27, [#allocation6], %s264_s22, %s264_s22, %s265_s23  }
  0x23   :  { %257 = dma.done.wait [#allocation3], 256  }
  0x24   :  { %258 = vsyncadd [#allocation3], 4294967040 }
  0x25   :  { %259 = dma.done.wait [#allocation6], 512  }
  0x26   :  { %260 = vsyncadd [#allocation6], 4294966784  ;;  %vm56_vm0 = vcmask 261120   ;;  %v45_v0 = vld [vmem:[#allocation5] sm:$0xff]  ;;  %v46_v1 = vld [vmem:[#allocation5 + $0x8] sm:$0xff]  ;;  %s267_s11 = smov [#allocation7]  }
  0x27   :  { %v47_v2 = vld [vmem:[#allocation5 + $0x10] sm:$0xff]  ;;  %v178_v3 = vpack.c.bf16 %v46_v1, %v45_v0  ;;  %v48_v4 = vld [vmem:[#allocation5 + $0x18] sm:$0xff]  ;;  %s145_s12 = sshll.u32 %s267_s11, 4  ;;  %s146_s12 = int_to_ptr.vmem [resolvable:$true] %s145_s12 }
  0x28   :  { %v43_v5 = vld [vmem:[#allocation2] sm:$0xff]  ;;  %v182_v6 = vpack.c.bf16 %v48_v4, %v47_v2  ;;  %v44_v7 = vld [vmem:[#allocation2 + $0x8] sm:$0xff]  ;;  %s235_s13 = scalar_lea.vmem %s146_s12, 256  ;;  %p240_p3 = scmp.lt.s32.totalorder %s146_s12, %s146_s12 }
  0x29   :  { %175 = vmatprep.mubr.msk.f32.mxu0 %vm56_vm0, %v43_v5  ;;  %179 = vmatprep.subr.bf16.mxu0 %v178_v3  ;;  %v158_v8 = vld [vmem:[%s342_s2] ss:$0 sm:$0xff]  ;;  %p236_p2 = scmp.ne.s32.totalorder %s146_s12, %s235_s13  ;;  %p241_p4 = scmp.lt.s32.totalorder %s235_s13, %s235_s13 }
  0x2a   :  { %181 = vmatpush3.bf16.msra.mxu0 %v178_v3 }
  0x2b   :  { %183 = vmatprep.subr.bf16.mxu0 %v182_v6  ;;  %p242_p5 = por %p241_p4, %p240_p3 }
  0x2d   :  { %p243_p6 = pnand %p242_p5, %p236_p2 }
  0x2e   :  { %185 = vmatpush3.bf16.msra.mxu0 %v182_v6 }
  0x31   :  { %176 = vmatmul.mubr.msk.f32.vlgmr.msra.gmra.mrb[0].mxu0 %vm56_vm0, %v44_v7 }
 0x104   :  { %v177_v9 = vpop.f32.mrb[0].mxu0 }
 0x105   :  { %v135_v10 = vadd.f32 %v177_v9, %v158_v8  ;;  %v129_v11 = vpop.f32.mrb[1].mxu0 }
 0x106   :  { %v130_v12 = vadd.f32 %v158_v8, %v129_v11 }
 0x107   :  { %139 = vst.msk [vmem:[#allocation7 + $0x8] sm:$0xff] %vm56_vm0, %v135_v10 }
 0x108   :  { %138 = vst.msk [vmem:[#allocation7] sm:$0xff] %vm56_vm0, %v130_v12 }
 0x109   :  { %246 = shalt.err (!%p243_p6)
}
 0x10a   :  { %s247_s15 = scalar_lea.hbm %s343_s3, 256 }
 0x10b   :  { %p248_p7 = scmp.ne.s32.totalorder %s343_s3, %s247_s15  ;;  %p251_p8 = scmp.lt.u32.totalorder %s247_s15, %s343_s3 }
 0x10d   :  { %p253_p9 = pnand %p251_p8, %p248_p7 }
 0x10f   :  { %256 = shalt.err (!%p253_p9)
}
 0x110   :  { %151 = dma.vmem_to_hbm [thread:$0]  %s146_s12, 256, %s343_s3, [#allocation4], %s264_s22, %s264_s22, %s265_s23  }
 0x111   :  { %261 = dma.done.wait [#allocation4], 256  }
 0x112   :  { %262 = vsyncadd [#allocation4], 4294967040 }
 0x113   :  { %155 = vsyncpa [#allocation3], 1 }
 0x114   :  { %156 = vsyncpa [#allocation6], 1 }
 0x115   :  { %157 = vsyncpa [#allocation4], 1 }

</bundles_post_ra>
